<compile_context>
chip_gen: v5e
topology: v5e:2x2
jax: 0.10.0
libtpu: 0.0.40
codegen_flags: <defaults>
</compile_context>

<pallas_src>
import jax
import jax.numpy as jnp
from jax.experimental import pallas as pl
from jax.experimental.pallas import tpu as pltpu

HIDDEN = 16  # hard-wired by the module: Linear(embedding_dim, 16) -> Linear(16, 1)


def _group_attn_kernel(x_ref, p_ref, out_ref):
    """Gb groups per grid step.

    x_ref:   (Gb, N, D)      member embeddings of Gb groups
    p_ref:   (D + 2, 16)     rows [0:D]=W1, row D=b1, row D+1=W2^T (VMEM-resident)
    out_ref: (1, 1, Gb*N)    per-group softmax weights, lane-dense slab
    """
    gb, n, d = x_ref.shape

    x = x_ref[...].reshape(gb * n, d)          # collapse groups into member rows
    w1 = p_ref[0:d, :]                         # (D, 16)   -- static slices of the
    b1 = p_ref[d:d + 1, :]                     # (1, 16)      resident param block
    w2 = p_ref[d + 1:d + 2, :]                 # (1, 16)   == torch W2 (Linear(16,1))

    # Linear(D, 16) + ReLU over all Gb*N member rows in ONE MXU pass.
    # (Dropout(p=0) is the identity.)
    h = jnp.dot(x, w1, preferred_element_type=jnp.float32) + b1
    h = jnp.maximum(h, 0.0)                    # (Gb*N, 16)

    # Linear(16, 1) as a VPU multiply + 16-lane reduce (no MXU round trip).
    # b2 is omitted on purpose: softmax is invariant to a constant shift.
    s = jnp.sum(h.reshape(gb, n, HIDDEN) * w2, axis=-1)    # (Gb, N)

    # Per-group numerically-stable softmax (lane reduces over N).
    m = jnp.max(s, axis=-1, keepdims=True)                 # (Gb, 1)
    e = jnp.exp(s - m)                                     # (Gb, N)
    denom = jnp.sum(e, axis=-1, keepdims=True)             # (Gb, 1)
    w = e * pl.reciprocal(denom, approx=True)              # normalisation on EUP

    out_ref[...] = w.reshape(1, 1, gb * n)     # one lane-dense row store per step


def batched_sub_user_interaction_attention_u(x, params, *, group_block=None):
    """x: (G, N, D) f32, params: (D+2, 16) f32.  Returns (G, N) softmax weights."""
    g, n, d = x.shape
    assert params.shape == (d + 2, HIDDEN), params.shape

    bytes_per_group = n * d * 4  # f32 member rows of one group

    if group_block is None:
        # Target >= 256 member rows per MXU pass and ~1 MiB per x DMA ...
        gb = max(256 // max(n, 1), (1 << 20) // max(bytes_per_group, 1), 1)
        # ... capped so double-buffered x blocks stay well inside VMEM (v7x: 64 MiB).
        while gb > 1 and 2 * gb * bytes_per_group > (16 << 20):
            gb //= 2
        gb = min(gb, g)
        # Prefer >= 2 grid steps so both v7x TensorCores get work.
        if gb == g and g > 1:
            gb = (g + 1) // 2
    else:
        gb = max(1, min(group_block, g))

    num_steps = -(-g // gb)
    g_pad = num_steps * gb
    if g_pad != g:
        # Zero-pad tail groups; each padded group yields an independent (uniform)
        # softmax row that is dropped below, so it cannot leak into real outputs.
        x = jnp.concatenate([x, jnp.zeros((g_pad - g, n, d), x.dtype)], axis=0)

    flops = 2 * g_pad * n * d * HIDDEN + 4 * g_pad * n * HIDDEN
    bytes_accessed = g_pad * n * d * 4 + (d + 2) * HIDDEN * 4 + g_pad * n * 4

    out = pl.pallas_call(
        _group_attn_kernel,
        out_shape=jax.ShapeDtypeStruct((num_steps, 1, gb * n), jnp.float32),
        grid=(num_steps,),
        in_specs=[
            # Gb groups per grid step.
            pl.BlockSpec((gb, n, d), lambda i: (i, 0, 0)),
            # Packed parameters: same block every step -> stays resident in VMEM.
            pl.BlockSpec((d + 2, HIDDEN), lambda i: (0, 0)),
        ],
        out_specs=pl.BlockSpec((1, 1, gb * n), lambda i: (i, 0, 0)),
        compiler_params=pltpu.CompilerParams(
            dimension_semantics=("parallel",),   # group-blocks shard across TCs (v7x)
            vmem_limit_bytes=32 << 20,           # > v5e's 16 MiB default, safe on v7x
        ),
        cost_estimate=pl.CostEstimate(
            flops=flops,
            transcendentals=g_pad * n,
            bytes_accessed=bytes_accessed,
        ),
    )(x, params)
    return out.reshape(g_pad, n)[:g]


def sub_user_interaction_attention_u(x, params):
    """Single group, matching the torch module: x (N, D) -> weights (1, N)."""
    return batched_sub_user_interaction_attention_u(x[None], params).reshape(1, -1)


def pack_params(w1, b1, w2):
    """Pack W1 (D,16), b1 (1,16)/(16,), W2 (16,1) into one (D+2, 16) array."""
    return jnp.concatenate(
        [w1, b1.reshape(1, HIDDEN), w2.reshape(1, HIDDEN)], axis=0
    ).astype(jnp.float32)


def _reference(x, w1, b1, w2, b2):
    h = jnp.maximum(x @ w1 + b1, 0.0)
    s = h @ w2 + b2
    return jax.nn.softmax(s.reshape(1, -1), axis=1)


if __name__ == "__main__":
    # Small shapes consistent with the module: G groups, N members, embedding D.
    G, N, D = 4, 8, 32

    key = jax.random.PRNGKey(0)
    kx, kw1, kb1, kw2, kb2 = jax.random.split(key, 5)

    x = jax.random.normal(kx, (G, N, D), dtype=jnp.float32)

    # Deterministic parameter init (shapes implied by the module's __init__).
    bound1 = 1.0 / (D ** 0.5)
    w1 = jax.random.uniform(kw1, (D, HIDDEN), jnp.float32, -bound1, bound1)
    b1 = jax.random.uniform(kb1, (1, HIDDEN), jnp.float32, -bound1, bound1)
    bound2 = 1.0 / (HIDDEN ** 0.5)
    w2 = jax.random.uniform(kw2, (HIDDEN, 1), jnp.float32, -bound2, bound2)
    b2 = jax.random.uniform(kb2, (1, 1), jnp.float32, -bound2, bound2)

    params = pack_params(w1, b1, w2)  # b2 not needed: softmax shift invariance

    # Batched (gridded) path: Gb groups per step, lane-dense output slab.
    weights = batched_sub_user_interaction_attention_u(x, params)
    weights = jax.block_until_ready(weights)
    assert weights.shape == (G, N), weights.shape

    # Per-group reference (includes b2; it must cancel under softmax).
    for gi in range(G):
        ref_g = _reference(x[gi], w1, b1, w2, b2).reshape(-1)
        assert jnp.allclose(weights[gi], ref_g, atol=2e-3, rtol=2e-3), (gi, weights[gi], ref_g)
        assert jnp.allclose(jnp.sum(weights[gi]), 1.0, atol=1e-2)

    # Tail / padding path: G not divisible by the group block.
    w_tail = batched_sub_user_interaction_attention_u(x[:3], params, group_block=2)
    w_tail = jax.block_until_ready(w_tail)
    assert w_tail.shape == (3, N), w_tail.shape
    for gi in range(3):
        ref_g = _reference(x[gi], w1, b1, w2, b2).reshape(-1)
        assert jnp.allclose(w_tail[gi], ref_g, atol=2e-3, rtol=2e-3), (gi, w_tail[gi], ref_g)

    # Single-group path matching the torch module's (1, N) return shape.
    w_single = sub_user_interaction_attention_u(x[0], params)
    w_single = jax.block_until_ready(w_single)
    assert w_single.shape == (1, N), w_single.shape
    assert jnp.allclose(w_single, _reference(x[0], w1, b1, w2, b2), atol=2e-3, rtol=2e-3)

    print("KERNEL_OK")
</pallas_src>

<mosaic_0001>
module attributes {stable_mosaic.version = 11 : i64} {
  func.func @_group_attn_kernel(%arg0: i32, %arg1: memref<2x8x32xf32, #tpu.memory_space<vmem>>, %arg2: memref<34x16xf32, #tpu.memory_space<vmem>>, %arg3: memref<1x1x16xf32, #tpu.memory_space<vmem>>) attributes {dimension_semantics = [#tpu.dimension_semantics<parallel>], iteration_bounds = array<i64: 2>, scalar_prefetch = 0 : i64, scratch_operands = 0 : i64, tpu.core_type = #tpu.core_type<tc>, window_params = [{transform_indices = @transform_0, window_bounds = array<i64: 2, 8, 32>}, {pipeline_mode = #tpu.pipeline_mode<synchronous>, transform_indices = @transform_1, window_bounds = array<i64: 34, 16>}, {transform_indices = @transform_2, window_bounds = array<i64: 1, 1, 16>}]} {
    %c0 = arith.constant 0 : index
    %c0_0 = arith.constant 0 : index
    %c0_1 = arith.constant 0 : index
    %0 = vector.load %arg1[%c0, %c0_0, %c0_1] : memref<2x8x32xf32, #tpu.memory_space<vmem>>, vector<2x8x32xf32>
    %1 = vector.shape_cast %0 : vector<2x8x32xf32> to vector<16x32xf32>
    %c0_2 = arith.constant 0 : index
    %c0_3 = arith.constant 0 : index
    %2 = vector.load %arg2[%c0_2, %c0_3] : memref<34x16xf32, #tpu.memory_space<vmem>>, vector<32x16xf32>
    %c32 = arith.constant 32 : index
    %c0_4 = arith.constant 0 : index
    %3 = vector.load %arg2[%c32, %c0_4] : memref<34x16xf32, #tpu.memory_space<vmem>>, vector<1x16xf32>
    %c33 = arith.constant 33 : index
    %c0_5 = arith.constant 0 : index
    %4 = vector.load %arg2[%c33, %c0_5] : memref<34x16xf32, #tpu.memory_space<vmem>>, vector<1x16xf32>
    %cst = arith.constant dense<0.000000e+00> : vector<16x16xf32>
    %5 = tpu.matmul %1, %2, %cst {dimension_numbers = #tpu.dot_dimension_numbers<[1], [0], [0], [1], [0, 0, 1, 1], [], []>} : vector<16x32xf32>, vector<32x16xf32>, vector<16x16xf32> -> vector<16x16xf32>
    %6 = vector.broadcast %3 : vector<1x16xf32> to vector<16x16xf32>
    %7 = arith.addf %5, %6 : vector<16x16xf32>
    %cst_6 = arith.constant 0.000000e+00 : f32
    %8 = vector.broadcast %cst_6 : f32 to vector<16x16xf32>
    %9 = arith.maximumf %7, %8 : vector<16x16xf32>
    %10 = vector.shape_cast %9 : vector<16x16xf32> to vector<2x8x16xf32>
    %11 = vector.shape_cast %4 : vector<1x16xf32> to vector<1x1x16xf32>
    %12 = vector.broadcast %11 : vector<1x1x16xf32> to vector<2x8x16xf32>
    %13 = arith.mulf %10, %12 : vector<2x8x16xf32>
    %cst_7 = arith.constant dense<0.000000e+00> : vector<2x8xf32>
    %14 = vector.multi_reduction <add>, %13, %cst_7 [2] : vector<2x8x16xf32> to vector<2x8xf32>
    %cst_8 = arith.constant dense<0xFF800000> : vector<2xf32>
    %15 = vector.multi_reduction <maximumf>, %14, %cst_8 [1] : vector<2x8xf32> to vector<2xf32>
    %16 = vector.shape_cast %15 : vector<2xf32> to vector<2x1xf32>
    %17 = vector.broadcast %16 : vector<2x1xf32> to vector<2x8xf32>
    %18 = arith.subf %14, %17 : vector<2x8xf32>
    %19 = math.exp %18 : vector<2x8xf32>
    %cst_9 = arith.constant dense<0.000000e+00> : vector<2xf32>
    %20 = vector.multi_reduction <add>, %19, %cst_9 [1] : vector<2x8xf32> to vector<2xf32>
    %21 = vector.shape_cast %20 : vector<2xf32> to vector<2x1xf32>
    %22 = tpu.reciprocal %21 {approx = true} : vector<2x1xf32> -> vector<2x1xf32>
    %23 = vector.broadcast %22 : vector<2x1xf32> to vector<2x8xf32>
    %24 = arith.mulf %19, %23 : vector<2x8xf32>
    %25 = vector.shape_cast %24 : vector<2x8xf32> to vector<1x1x16xf32>
    %c0_10 = arith.constant 0 : index
    %c0_11 = arith.constant 0 : index
    %c0_12 = arith.constant 0 : index
    %26 = vector.load %arg3[%c0_10, %c0_11, %c0_12] : memref<1x1x16xf32, #tpu.memory_space<vmem>>, vector<1x1x16xf32>
    tpu.vector_store %arg3[%c0_10, %c0_11, %c0_12], %25 {strides = array<i32>} : memref<1x1x16xf32, #tpu.memory_space<vmem>>, vector<1x1x16xf32>,
    return
  }
  func.func @transform_0(%arg0: i32) -> (i32, i32, i32) {
    %c0_i32 = arith.constant 0 : i32
    %c0_i32_0 = arith.constant 0 : i32
    %c0_i32_1 = arith.constant 0 : i32
    return %arg0, %c0_i32, %c0_i32_0 : i32, i32, i32
  }
  func.func @transform_1(%arg0: i32) -> (i32, i32) {
    %c0_i32 = arith.constant 0 : i32
    %c0_i32_0 = arith.constant 0 : i32
    %c0_i32_1 = arith.constant 0 : i32
    return %c0_i32, %c0_i32_0 : i32, i32
  }
  func.func @transform_2(%arg0: i32) -> (i32, i32, i32) {
    %c0_i32 = arith.constant 0 : i32
    %c0_i32_0 = arith.constant 0 : i32
    %c0_i32_1 = arith.constant 0 : i32
    return %arg0, %c0_i32, %c0_i32_0 : i32, i32, i32
  }
}

</mosaic_0001>

<bundles_post_ra>
// kernel: tpu_custom_call.1
= control target key start
LH: loop header
LB: loop body
LE: loop exit
PB: predicated region body
PF: predicated region fallthrough
CT: control target
= control target key end

     0   :  { %7 = vsyncpa [#allocation3], 0  ;;  %s576_s0 = inlined_call_operand.vmem [shape: f32[4,8,32], index: 0, kind: input, shape index: {}]   ;;  %s577_s1 = inlined_call_operand.vmem [shape: f32[34,16], index: 1, kind: input, shape index: {}]   ;;  %s578_s2 = inlined_call_operand.hbm [shape: f32[2,1,16], index: 2, kind: output, shape index: {}]  }
   0x1   :  { %9 = vsyncpa [#allocation3 + $0x1], 0  ;;  %s470_s9 = smov 0   ;;  %s472_s10 = smov 0  }
   0x2   :  { %s474_s11 = smov 0   ;;  %s476_s12 = smov 0  }
   0x3 LB: > { %s491_s13 = sadd.s32 4294967295, %s452_s12   ;;  %s325_s14 = sadd.s32 4294967294, %s452_s12   ;;  %s452_s12 = sphi %s476_s12, %s584_s12   ;;  %s448_s11 = sphi %s474_s11, %s583_s11   ;;  %s444_s10 = sphi %s472_s10, %s582_s10   ;;  %s440_s9 = sphi %s470_s9, %s581_s9  }
   0x4   : > { %s495_s15 = sadd.s32 1, %s452_s12   ;;  %s69_s16 = sadd.s32 1, %s448_s11 }
   0x5   : > { %s66_s17 = ssub.s32 %s452_s12, %s495_s15  ;;  %p79_p0 = scmp.ne.s32.totalorder %s448_s11, %s444_s10 }
   0x6   : > { %p67_p1 = scmp.eq.s32.totalorder %s66_s17, 0  ;;  %p80_p2 = scmp.eq.s32.totalorder %s491_s13, 1 }
   0x7   : > { %p85_p3 = scmp.ne.s32.totalorder %s444_s10, %s440_s9  ;;  %p86_p4 = scmp.eq.s32.totalorder %s325_s14, 1 }
   0x8   : > { %s506_s18 = scalar_select %p67_p1, %s448_s11, %s69_s16  }
   0x9   : > { %p508_p5 = por %p80_p2, %p79_p0  ;;  %p512_p6 = por %p86_p4, %p85_p3 }
   0xa   : > { %p328_p7 = scmp.ge.s32.totalorder %s452_s12, 1  ;;  %p116_p8 = scmp.lt.s32.totalorder %s452_s12, 3 }
   0xc   : > { %p117_p9 = pnand %p328_p7, %p116_p8 }
   0xd   : > { %s329_s25 = sshll.u32 (!%p117_p9), %s491_s13, 1  ;;  %s135_s16 = sand.u32 (!%p117_p9), 1, %s444_s10  }
   0xe   : > { %120 = sbr.rel (%p117_p9) target bundleno = 784 (0x310), region = 28  ;;  %p138_p10 = scmp.lt.s32.totalorder (!%p117_p9), %s329_s25, 3 }
   0xf   : > { %s266_s22 = scalar_lea.hbm (!%p117_p9), %s578_s2, %s491_s13  ;;  %s136_s23 = scalar_lea.vmem (!%p117_p9), [#allocation2], %s135_s16 }
  0x10   : > { %s268_s24 = sshll.u32 (!%p117_p9), %s136_s23, 4  ;;  %s258_s26 = scalar_lea.sflag (!%p117_p9), [#allocation3], %s135_s16  ;;  %s269_s24 = int_to_ptr.vmem [resolvable:$true] %s268_s24 }
  0x13   : > { %v148_v0 = vld [vmem:[%s577_s1 + $0x18] sm:$0xff]  ;;  %v147_v1 = vld [vmem:[%s577_s1 + $0x10] sm:$0xff]  ;;  %v146_v2 = vld [vmem:[%s577_s1 + $0x8] sm:$0xff]  ;;  %s586_s25 = smov (!%p138_p10, %s329_s25), 3  ;;  %vm152_vm0 = vcmask 261120   ;;  %vm187_vm1 = vcmask 130048   ;;  %v196_v19 = vlaneseq }
  0x14   : > { %171 = vmatpush.msra.mxu0 %v148_v0  ;;  %335 = vmatpush.msra.mxu1 %v148_v0  ;;  %v145_v3 = vld [vmem:[%s577_s1] sm:$0xff]  ;;  %s330_s30 = sshll.u32 %s586_s25, 3  ;;  %vm200_vm2 = vcmask 1041409   ;;  %vm203_vm3 = vcmask 58368   ;;  %v454_v26 = vmov 0   ;;  %s270_s25 = sshll.u32 %s266_s22, 4  ;;  %s271_s25 = int_to_ptr.hbm [resolvable:$true] %s270_s25 }
  0x15   : > { %s141_s5 = scalar_lea.vmem %s576_s0, %s330_s30  ;;  %v382_v6 = vld [vmem:[%s577_s1 + $0x20] ss:$0 sm:$0xff]  ;;  %v383_v11 = vld [vmem:[%s577_s1 + $0x21] ss:$0 sm:$0xff]  ;;  %v197_v20 = vand.u32 127, %v196_v19  ;;  %380 = vset.pattern.permute.xlu2 %v454_v26  ;;  %379 = vset.pattern.permute.xlu1 %v454_v26  ;;  %vm252_vm4 = vcmask 130112  }
  0x16   : > { %172 = vmatpush.msra.mxu0 %v147_v1  ;;  %336 = vmatpush.msra.mxu1 %v147_v1  ;;  %v143_v4 = vld [vmem:[%s141_s5] sm:$0xff]  ;;  %v144_v5 = vld [vmem:[%s141_s5 + $0x8] sm:$0xff]  ;;  %vm255_vm5 = vcmask 122880   ;;  %s404_s27 = sshra.s32 %s271_s25, 4  ;;  %s410_s30 = scalar_lea.hbm %s578_s2, 2  ;;  %s405_s27 = int_to_ptr.hbm [resolvable:$true] %s404_s27 }
  0x17   : > { %381 = vset.pattern.permute.xlu0 %v454_v26  ;;  %v250_v48 = vadd.s32 4294967288, %v197_v20  ;;  %s406_s28 = scalar_lea.hbm %s405_s27, 1  ;;  %p411_p0 = scmp.lt.s32.totalorder %s405_s27, %s578_s2 }
  0x18   : > { %173 = vmatpush.msra.mxu0 %v146_v2  ;;  %337 = vmatpush.msra.mxu1 %v146_v2  ;;  %p407_p11 = scmp.ne.s32.totalorder %s405_s27, %s406_s28  ;;  %p412_p1 = scmp.lt.s32.totalorder %s410_s30, %s406_s28 }
  0x1a   : > { %174 = vmatpush.msra.mxu0 %v145_v3  ;;  %338 = vmatpush.msra.mxu1 %v145_v3  ;;  %p408_p12 = pnand %p407_p11, %p508_p5  ;;  %p413_p2 = por %p412_p1, %p411_p0 }
  0x1b   : > { %331 = vmatmul.msk.f32.vlgmr.msra.gmra.mxu0 %vm152_vm0, %v143_v4  ;;  %332 = vmatmul.msk.f32.vlgmr.msra.gmra.mxu1 %vm152_vm0, %v144_v5 }
  0x1c   : > { %p409_p13 = pneg %p408_p12 }
  0x1e   : > { %p414_p3 = pnand %p413_p2, %p409_p13 }
  0x98   : > { %v176_v7 = vpop.f32.mrf.mxu0  ;;  %v179_v8 = vpop.f32.mrf.mxu1 }
  0x99   : > { %v177_v9 = vadd.f32 %v382_v6, %v176_v7  ;;  %v180_v10 = vadd.f32 %v382_v6, %v179_v8 }
  0x9b   : > { %v182_v12 = vmax.f32 %v177_v9, 0.0  ;;  %v183_v13 = vmax.f32 %v180_v10, 0.0 }
  0x9d   : > { %v185_v14 = vmul.f32 %v383_v11, %v182_v12  ;;  %v186_v16 = vmul.f32 %v383_v11, %v183_v13 }
  0x9f   : > { %v188_v15 = vsel %vm187_vm1, %v185_v14, 0.0  ;;  %v191_v17 = vsel %vm187_vm1, %v186_v16, 0.0 }
  0xa0   : > { %189 = vadd.xlane.f32.xlu0 %v188_v15 }
  0xa8   : > { %192 = vadd.xlane.f32.xlu0 %v191_v17 }
 0x113   : > { %v190_v18 = vpop.xlane.xlu0 %189 }
 0x114   : > { %v198_v22 = vperm.slane %v190_v18, %v197_v20 }
 0x11b   : > { %v193_v21 = vpop.xlane.xlu0 %192 }
 0x11c   : > { %v199_v23 = vperm.slane %v193_v21, %v197_v20 }
 0x11e   : > { %v201_v24 = vsel %vm200_vm2, %v199_v23, %v198_v22 }
 0x11f   : > { %v204_v25 = vsel %vm203_vm3, %v201_v24, -inf }
 0x120   : > { %205 = vmax.xlane.f32.xlu1 %v204_v25 }
 0x193   : > { %v206_v27 = vpop.xlane.xlu1 %205 }
 0x194   : > { %v208_v28 = vperm.slane %v206_v27, 0  ;;  %v209_v29 = vperm.slane %v206_v27, 1 }
 0x196   : > { %v212_v30 = vsub.f32 %v190_v18, %v208_v28  ;;  %v213_v31 = vsub.f32 %v193_v21, %v209_v29 }
 0x198   : > { %v214_v32 = vmul.f32 1.442695, %v212_v30  ;;  %v216_v33 = vmul.f32 1.442695, %v213_v31 }
 0x19a   : > { %384 = vpow2.f32 %v214_v32 }
 0x19b   : > { %386 = vpow2.f32 %v216_v33 }
 0x1a0   : > { %v385_v34 = vpop.eup %384 }
 0x1a1   : > { %v387_v35 = vpop.eup %386  ;;  %221 = vperm.xlu1 %379, %v385_v34  }
 0x1a2   : > { %224 = vperm.xlu2 %380, %v387_v35  }
 0x1fc   : > { %v225_v36 = vpop.permute.xlu2 %224 }
 0x1fd   : > { %v227_v38 = vperm.slane %v225_v36, %v197_v20 }
 0x213   : > { %v222_v37 = vpop.permute.xlu1 %221 }
 0x214   : > { %v226_v39 = vperm.slane %v222_v37, %v197_v20 }
 0x216   : > { %v228_v40 = vsel %vm200_vm2, %v227_v38, %v226_v39 }
 0x217   : > { %v230_v41 = vsel %vm203_vm3, %v228_v40, 0.0 }
 0x218   : > { %231 = vadd.xlane.f32.xlu2 %v230_v41 }
 0x28b   : > { %v232_v42 = vpop.xlane.xlu2 %231 }
 0x28c   : > { %388 = vrcp.f32 %v232_v42 }
 0x292   : > { %v389_v43 = vpop.eup %388 }
 0x293   : > { %v236_v44 = vperm.slane %v389_v43, 1  ;;  %v235_v45 = vperm.slane %v389_v43, 0 }
 0x295   : > { %v240_v46 = vmul.f32 %v387_v35, %v236_v44  ;;  %v239_v47 = vmul.f32 %v385_v34, %v235_v45 }
 0x297   : > { %247 = vperm.xlu1 %379, %v240_v46   ;;  %244 = vperm.xlu0 %381, %v239_v47  }
 0x309   : > { %v248_v49 = vpop.permute.xlu1 %247  ;;  %v245_v50 = vpop.permute.xlu0 %244 }
 0x30a   : > { %v251_v51 = vperm.slane %v248_v49, %v250_v48  ;;  %v249_v52 = vperm.slane %v245_v50, %v197_v20 }
 0x30c   : > { %v253_v53 = vsel %vm252_vm4, %v251_v51, %v249_v52 }
 0x30d   : > { %256 = vst.msk [vmem:[%s136_s23] sm:$0x1] %vm255_vm5, %v253_v53 }
 0x30e   : > { %417 = shalt.err (!%p414_p3)
}
 0x30f   : > { %339 = dma.vmem_to_hbm [thread:$0]  (%p508_p5), %s269_s24, 16, %s271_s25, %s258_s26  }
 0x310 PF: > { %p345_p4 = scmp.ge.s32.totalorder %s452_s12, 2  ;;  %s282_s5 = sand.u32 1, %s440_s9  }
 0x311   : > { %s283_s6 = scalar_lea.sflag [#allocation3], %s282_s5 }
 0x312   : > { %p342_p7 = pnand %p345_p4, %p512_p6 }
 0x314   : > { %p343_p8 = pneg %p342_p7 }
 0x316   : > { %435 = dma.done.wait (%p343_p8), %s283_s6, 16  }
 0x317   : > { %437 = vsyncadd (%p343_p8), %s283_s6, 4294967280  ;;  %p12_p9 = scmp.ge.s32.totalorder %s495_s15, 4   ;;  %s581_s9 = smov %s444_s10 }
 0x318   : > { %s582_s10 = smov %s448_s11  ;;  %s583_s11 = smov %s506_s18 }
 0x319   : > { %s584_s12 = smov %s495_s15  ;;  %14 = sbr.rel (!%p12_p9) target bundleno = 3 (0x3), region = 63 }
 0x31e   :  { %288 = vsyncpa [#allocation3], 1 }
 0x31f   :  { %290 = vsyncpa [#allocation3 + $0x1], 1 }

</bundles_post_ra>
